<compile_context>
chip_gen: v7x
topology: tpu7x:2x2x1
jax: 0.10.0
libtpu: 0.0.40
codegen_flags: <defaults>
</compile_context>

<pallas_src>
import jax
import jax.numpy as jnp
from jax import lax
from jax.experimental import pallas as pl
from jax.experimental.pallas import tpu as pltpu


def _gram_pair_kernel(lx_ref, ly_ref, sx_ref, sy_ref):
    # sigma = L @ L.T without materializing the transpose:
    # contract dim 1 of both operands (MXU matmul, f32 accumulation).
    lx = lx_ref[...]
    ly = ly_ref[...]
    sx_ref[...] = lax.dot_general(
        lx, lx,
        dimension_numbers=(((1,), (1,)), ((), ())),
        preferred_element_type=jnp.float32,
    ).astype(sx_ref.dtype)
    sy_ref[...] = lax.dot_general(
        ly, ly,
        dimension_numbers=(((1,), (1,)), ((), ())),
        preferred_element_type=jnp.float32,
    ).astype(sy_ref.dtype)


@jax.jit
def gram_pair(lx, ly):
    """Compute (lx @ lx.T, ly @ ly.T) in a single fused Pallas TPU kernel."""
    nx = lx.shape[0]
    ny = ly.shape[0]
    vmem = pl.BlockSpec(memory_space=pltpu.MemorySpace.VMEM)
    return pl.pallas_call(
        _gram_pair_kernel,
        out_shape=(
            jax.ShapeDtypeStruct((nx, nx), lx.dtype),
            jax.ShapeDtypeStruct((ny, ny), ly.dtype),
        ),
        in_specs=[vmem, vmem],
        out_specs=(vmem, vmem),
    )(lx, ly)


class SystemPallas:
    """JAX/Pallas counterpart of the abstract torch `System` module."""

    def __init__(self, x_dim, y_dim, u_dim, lx, ly):
        self.x_dim, self.u_dim, self.y_dim = x_dim, u_dim, y_dim
        self.lx = lx
        self.ly = ly
        self._sigma_cache = None  # avoid re-dispatching on every property read

    # TODO(synk): f / h / linearize / forward are abstract in the reference
    # module (raise NotImplementedError); nothing to translate.

    def _sigmas(self):
        if self._sigma_cache is None:
            self._sigma_cache = gram_pair(self.lx, self.ly)
        return self._sigma_cache

    @property
    def sigmax(self):
        return self._sigmas()[0]

    @property
    def sigmay(self):
        return self._sigmas()[1]


if __name__ == "__main__":
    key = jax.random.PRNGKey(0)
    x_dim, y_dim, u_dim = 32, 16, 4

    kx, ky = jax.random.split(key)
    # Deterministic synthetic noise-factor parameters.
    lx = jax.random.normal(kx, (x_dim, x_dim), dtype=jnp.float32) * 0.1
    ly = jax.random.normal(ky, (y_dim, y_dim), dtype=jnp.float32) * 0.1

    sys = SystemPallas(x_dim, y_dim, u_dim, lx, ly)

    sigmax = jax.block_until_ready(sys.sigmax)
    sigmay = jax.block_until_ready(sys.sigmay)

    # Correctness check against plain-JAX reference.
    ref_x = lx @ lx.T
    ref_y = ly @ ly.T
    assert sigmax.shape == (x_dim, x_dim)
    assert sigmay.shape == (y_dim, y_dim)
    assert jnp.allclose(sigmax, ref_x, atol=1e-5, rtol=1e-5)
    assert jnp.allclose(sigmay, ref_y, atol=1e-5, rtol=1e-5)

    print("KERNEL_OK")
</pallas_src>

<mosaic_0001>
module attributes {stable_mosaic.version = 11 : i64} {
  func.func @_gram_pair_kernel(%arg0: memref<32x32xf32, #tpu.memory_space<vmem>>, %arg1: memref<16x16xf32, #tpu.memory_space<vmem>>, %arg2: memref<32x32xf32, #tpu.memory_space<vmem>>, %arg3: memref<16x16xf32, #tpu.memory_space<vmem>>) attributes {dimension_semantics = [], scalar_prefetch = 0 : i64, scratch_operands = 0 : i64, tpu.core_type = #tpu.core_type<tc>} {
    %c0 = arith.constant 0 : index
    %c0_0 = arith.constant 0 : index
    %0 = vector.load %arg0[%c0, %c0_0] : memref<32x32xf32, #tpu.memory_space<vmem>>, vector<32x32xf32>
    %c0_1 = arith.constant 0 : index
    %c0_2 = arith.constant 0 : index
    %1 = vector.load %arg1[%c0_1, %c0_2] : memref<16x16xf32, #tpu.memory_space<vmem>>, vector<16x16xf32>
    %cst = arith.constant dense<0.000000e+00> : vector<32x32xf32>
    %2 = tpu.matmul %0, %0, %cst {dimension_numbers = #tpu.dot_dimension_numbers<[1], [1], [0], [0], [0, 0, 1, 0], [], []>} : vector<32x32xf32>, vector<32x32xf32>, vector<32x32xf32> -> vector<32x32xf32>
    %c0_3 = arith.constant 0 : index
    %c0_4 = arith.constant 0 : index
    %3 = vector.load %arg2[%c0_3, %c0_4] : memref<32x32xf32, #tpu.memory_space<vmem>>, vector<32x32xf32>
    tpu.vector_store %arg2[%c0_3, %c0_4], %2 {strides = array<i32>} : memref<32x32xf32, #tpu.memory_space<vmem>>, vector<32x32xf32>,
    %cst_5 = arith.constant dense<0.000000e+00> : vector<16x16xf32>
    %4 = tpu.matmul %1, %1, %cst_5 {dimension_numbers = #tpu.dot_dimension_numbers<[1], [1], [0], [0], [0, 0, 1, 0], [], []>} : vector<16x16xf32>, vector<16x16xf32>, vector<16x16xf32> -> vector<16x16xf32>
    %c0_6 = arith.constant 0 : index
    %c0_7 = arith.constant 0 : index
    %5 = vector.load %arg3[%c0_6, %c0_7] : memref<16x16xf32, #tpu.memory_space<vmem>>, vector<16x16xf32>
    tpu.vector_store %arg3[%c0_6, %c0_7], %4 {strides = array<i32>} : memref<16x16xf32, #tpu.memory_space<vmem>>, vector<16x16xf32>,
    return
  }
}

</mosaic_0001>

<bundles_post_ra>
// kernel: gram_pair.1
= control target key start
LH: loop header
LB: loop body
LE: loop exit
PB: predicated region body
PF: predicated region fallthrough
CT: control target
= control target key end

     0   :  { %9 = vsyncpa [#allocation3], 0  ;;  %s556_s0 = inlined_call_operand.hbm [shape: f32[32,32], index: 0, kind: input, shape index: {}]   ;;  %s557_s1 = inlined_call_operand.hbm [shape: f32[16,16], index: 1, kind: input, shape index: {}]   ;;  %s558_s2 = inlined_call_operand.hbm [shape: f32[32,32], index: 2, kind: output, shape index: {0}]   ;;  %s559_s3 = inlined_call_operand.hbm [shape: f32[16,16], index: 3, kind: output, shape index: {1}]  }
   0x1   :  { %10 = vsyncpa [#allocation6], 0 }
   0x2   :  { %11 = vsyncpa [#allocation4], 0 }
   0x3   :  { %12 = vsyncpa [#allocation9], 0  ;;  %s434_s12 = smov [#allocation2]   ;;  %s338_s16 = scalar_lea.hbm %s556_s0, 512 }
   0x4   :  { %s18_s13 = sshll.u32 %s434_s12, 4  ;;  %p339_p0 = scmp.ne.s32.totalorder %s556_s0, %s338_s16  ;;  %s19_s13 = int_to_ptr.vmem [resolvable:$true] %s18_s13 }
   0x5   :  { %p342_p1 = scmp.lt.u32.totalorder %s338_s16, %s556_s0 }
   0x7   :  { %p344_p2 = pnand %p342_p1, %p339_p0 }
   0x9   :  { %347 = shalt.err (!%p344_p2)
}
   0xa   :  { %s348_s21 = scalar_lea.vmem %s19_s13, 512  ;;  %p353_p4 = scmp.lt.s32.totalorder %s19_s13, %s19_s13 }
   0xb   :  { %p349_p3 = scmp.ne.s32.totalorder %s19_s13, %s348_s21  ;;  %p354_p5 = scmp.lt.s32.totalorder %s348_s21, %s348_s21 }
   0xd   :  { %p355_p6 = por %p354_p5, %p353_p4 }
   0xf   :  { %p356_p7 = pnand %p355_p6, %p349_p3 }
  0x11   :  { %359 = shalt.err (!%p356_p7)
}
  0x12   :  { %s435_s22 = smov 128   ;;  %s436_s23 = smov 8  }
  0x13   :  { %24 = dma.hbm_to_vmem [thread:$0]  %s556_s0, 512, %s19_s13, [#allocation3], %s435_s22, %s435_s22, %s436_s23  }
  0x14   :  { %s437_s26 = smov [#allocation5]   ;;  %s360_s30 = scalar_lea.hbm %s557_s1, 256 }
  0x15   :  { %s30_s27 = sshll.u32 %s437_s26, 4  ;;  %p361_p8 = scmp.ne.s32.totalorder %s557_s1, %s360_s30  ;;  %s31_s27 = int_to_ptr.vmem [resolvable:$true] %s30_s27 }
  0x16   :  { %p364_p9 = scmp.lt.u32.totalorder %s360_s30, %s557_s1 }
  0x18   :  { %p366_p10 = pnand %p364_p9, %p361_p8 }
  0x1a   :  { %369 = shalt.err (!%p366_p10)
}
  0x1b   :  { %s370_s8 = scalar_lea.vmem %s31_s27, 256  ;;  %p375_p12 = scmp.lt.s32.totalorder %s31_s27, %s31_s27 }
  0x1c   :  { %p371_p11 = scmp.ne.s32.totalorder %s31_s27, %s370_s8  ;;  %p376_p13 = scmp.lt.s32.totalorder %s370_s8, %s370_s8 }
  0x1e   :  { %p377_p0 = por %p376_p13, %p375_p12 }
  0x20   :  { %p378_p1 = pnand %p377_p0, %p371_p11 }
  0x22   :  { %381 = shalt.err (!%p378_p1)
}
  0x23   :  { %36 = dma.hbm_to_vmem [thread:$0]  %s557_s1, 256, %s31_s27, [#allocation6], %s435_s22, %s435_s22, %s436_s23  }
  0x24   :  { %426 = dma.done.wait [#allocation3], 512  }
  0x25   :  { %427 = vsyncadd [#allocation3], 4294966784 }
  0x26   :  { %428 = dma.done.wait [#allocation6], 256  }
  0x27   :  { %429 = vsyncadd [#allocation6], 4294967040  ;;  %vm49_vm0 = vcmask 261120   ;;  %vm151_vm1 = vcmask 130048   ;;  %v43_v2 = vld [vmem:[#allocation2] sm:$0xff]  ;;  %v44_v3 = vld [vmem:[#allocation2 + $0x8] sm:$0xff] }
  0x28   :  { %vm492_vm2 = vmpackc.low %vm49_vm0, %vm49_vm0  ;;  %v45_v4 = vld [vmem:[#allocation2 + $0x10] sm:$0xff]  ;;  %v314_v5 = vpack.c.bf16 %v44_v3, %v43_v2  ;;  %v46_v6 = vld [vmem:[#allocation2 + $0x18] sm:$0xff]  ;;  %301 = vmatprep.mubr.msk.f32.mxu0 %vm49_vm0, %v43_v2  ;;  %s438_s1 = smov [#allocation8]  }
  0x29   :  { %vm498_vm3 = vmpackc.low %vm151_vm1, %vm151_vm1  ;;  %v47_v7 = vld [vmem:[#allocation5] sm:$0xff]  ;;  %v48_v8 = vld [vmem:[#allocation5 + $0x8] sm:$0xff]  ;;  %v320_v9 = vpack.c.bf16 %v46_v6, %v45_v4  ;;  %s252_s10 = sshll.u32 %s438_s1, 4  ;;  %s253_s10 = int_to_ptr.vmem [resolvable:$true] %s252_s10 }
  0x2a   :  { %v326_v10 = vpack.c.bf16 %v48_v8, %v47_v7  ;;  %311 = vmatprep.mubr.msk.f32.mxu1 %vm151_vm1, %v47_v7  ;;  %316 = vmatprep.subr.msk.bf16.mxu0 %vm492_vm2, %v314_v5  ;;  %s382_s11 = scalar_lea.vmem %s253_s10, 256  ;;  %p387_p3 = scmp.lt.s32.totalorder %s253_s10, %s253_s10 }
  0x2b   :  { %319 = vmatpush3.bf16.xpose.msk.msra.mxu0 %vm492_vm2, %v314_v5  ;;  %p383_p2 = scmp.ne.s32.totalorder %s253_s10, %s382_s11  ;;  %p388_p4 = scmp.lt.s32.totalorder %s382_s11, %s382_s11 }
  0x2c   :  { %328 = vmatprep.subr.msk.bf16.mxu1 %vm498_vm3, %v326_v10  ;;  %322 = vmatprep.subr.msk.bf16.mxu0 %vm492_vm2, %v320_v9 }
  0x2d   :  { %331 = vmatpush3.bf16.xpose.msk.msra.mxu1 %vm498_vm3, %v326_v10  ;;  %p389_p5 = por %p388_p4, %p387_p3 }
  0x2f   :  { %p390_p6 = pnand %p389_p5, %p383_p2 }
  0x33   :  { %325 = vmatpush3.bf16.xpose.msk.msra.mxu0 %vm492_vm2, %v320_v9 }
  0x34   :  { %312 = vmatmul.mubr.msk.f32.vlgmr.msra.gmra.mrb[0].mxu1 %vm151_vm1, %v48_v8 }
  0x3a   :  { %302 = vmatmul.mubr.msk.f32.vlgmr.msra.gmra.mrb[0].mxu0 %vm49_vm0, %v44_v3 }
  0x3b   :  { %304 = vmatprep.mubr.msk.f32.mxu0 %vm49_vm0, %v45_v4 }
  0x3e   :  { %305 = vmatmul.mubr.msk.f32.gmra.mrb[2].mxu0 %vm49_vm0, %v46_v6 }
 0x107   :  { %v313_v11 = vpop.f32.mrb[0].mxu1 }
 0x108   :  { %234 = vst.msk [vmem:[#allocation8 + $0x8] sm:$0xff] %vm151_vm1, %v313_v11  ;;  %v224_v12 = vpop.f32.mrb[1].mxu1 }
 0x109   :  { %233 = vst.msk [vmem:[#allocation8] sm:$0xff] %vm151_vm1, %v224_v12 }
 0x10a   :  { %393 = shalt.err (!%p390_p6)
}
 0x10b   :  { %s394_s14 = scalar_lea.hbm %s559_s3, 256 }
 0x10c   :  { %p395_p7 = scmp.ne.s32.totalorder %s559_s3, %s394_s14  ;;  %p398_p8 = scmp.lt.u32.totalorder %s394_s14, %s559_s3 }
 0x10e   :  { %p400_p9 = pnand %p398_p8, %p395_p7 }
 0x110   :  { %403 = shalt.err (!%p400_p9)
}
 0x111   :  { %258 = dma.vmem_to_hbm [thread:$0]  %s253_s10, 256, %s559_s3, [#allocation9], %s435_s22, %s435_s22, %s436_s23   ;;  %v303_v13 = vpop.f32.mrb[0].mxu0 }
 0x112   :  { %148 = vst.msk [vmem:[#allocation7 + $0x8] sm:$0xff] %vm49_vm0, %v303_v13  ;;  %v128_v14 = vpop.f32.mrb[1].mxu0  ;;  %s439_s21 = smov [#allocation7]  }
 0x113   :  { %s240_s24 = sshll.u32 %s439_s21, 4  ;;  %147 = vst.msk [vmem:[#allocation7] sm:$0xff] %vm49_vm0, %v128_v14  ;;  %v306_v15 = vpop.f32.mrb[2].mxu0  ;;  %s241_s24 = int_to_ptr.vmem [resolvable:$true] %s240_s24 }
 0x114   :  { %150 = vst.msk [vmem:[#allocation7 + $0x18] sm:$0xff] %vm49_vm0, %v306_v15  ;;  %v138_v16 = vpop.f32.mrb[3].mxu0  ;;  %s404_s25 = scalar_lea.vmem %s241_s24, 512  ;;  %p409_p11 = scmp.lt.s32.totalorder %s241_s24, %s241_s24 }
 0x115   :  { %149 = vst.msk [vmem:[#allocation7 + $0x10] sm:$0xff] %vm49_vm0, %v138_v16  ;;  %p405_p10 = scmp.ne.s32.totalorder %s241_s24, %s404_s25  ;;  %p410_p12 = scmp.lt.s32.totalorder %s404_s25, %s404_s25 }
 0x117   :  { %p411_p13 = por %p410_p12, %p409_p11 }
 0x119   :  { %p412_p0 = pnand %p411_p13, %p405_p10 }
 0x11b   :  { %415 = shalt.err (!%p412_p0)
}
 0x11c   :  { %s416_s27 = scalar_lea.hbm %s558_s2, 512 }
 0x11d   :  { %p417_p1 = scmp.ne.s32.totalorder %s558_s2, %s416_s27  ;;  %p420_p2 = scmp.lt.u32.totalorder %s416_s27, %s558_s2 }
 0x11f   :  { %p422_p3 = pnand %p420_p2, %p417_p1 }
 0x121   :  { %425 = shalt.err (!%p422_p3)
}
 0x122   :  { %246 = dma.vmem_to_hbm [thread:$0]  %s241_s24, 512, %s558_s2, [#allocation4], %s435_s22, %s435_s22, %s436_s23  }
 0x123   :  { %430 = dma.done.wait [#allocation4], 512  }
 0x124   :  { %431 = vsyncadd [#allocation4], 4294966784 }
 0x125   :  { %432 = dma.done.wait [#allocation9], 256  }
 0x126   :  { %433 = vsyncadd [#allocation9], 4294967040 }
 0x127   :  { %265 = vsyncpa [#allocation3], 1 }
 0x128   :  { %266 = vsyncpa [#allocation6], 1 }
 0x129   :  { %267 = vsyncpa [#allocation4], 1 }
 0x12a   :  { %268 = vsyncpa [#allocation9], 1 }

</bundles_post_ra>
